<compile_context>
chip_gen: v6e
topology: v6e:2x2x1
jax: 0.10.0
libtpu: 0.0.40
codegen_flags: <defaults>
</compile_context>

<pallas_src>
import jax
import jax.numpy as jnp
from jax.experimental import pallas as pl
from jax.experimental.pallas import tpu as pltpu


def skeleton_conv_kernel(w_ref, b_ref, x_ref, o_ref):
    # w_ref: SMEM (3,) f32   conv1 taps
    # b_ref: SMEM (1,) f32   conv1 bias
    # x_ref: VMEM (TILE_N, L)
    # o_ref: VMEM (TILE_N, 2L)
    x = x_ref[...]
    blk_n, l = x.shape
    w0 = w_ref[0]
    w1 = w_ref[1]
    w2 = w_ref[2]
    b = b_ref[0]

    # +/-1 lane shifts with zero boundary (Conv1d padding=1).  Values are
    # already in registers; the lane-offset concat lowers to XLU rotate+select.
    zero_col = jnp.zeros((blk_n, 1), dtype=x.dtype)
    x_prev = jnp.concatenate([zero_col, x[:, : l - 1]], axis=-1)
    x_next = jnp.concatenate([x[:, 1:], zero_col], axis=-1)

    # Conv1d(1, 1, kernel_size=3, padding=1) applied independently to each row.
    # Weights are f32 scalars, so mixed-dtype inputs accumulate in f32.
    y = w0 * x_prev + w1 * x + w2 * x_next + b

    # out = cat([x, conv1(x)], dim=-1) -- single pass over the tile.
    if l % 128 == 0:
        # Both halves start at lane-aligned offsets -> full-width stores.
        o_ref[:, 0:l] = x.astype(o_ref.dtype)
        o_ref[:, l : 2 * l] = y.astype(o_ref.dtype)
    else:
        # Combine in registers so the store starts at lane 0 instead of a
        # second unaligned store at lane offset l.
        o_ref[...] = jnp.concatenate(
            [x.astype(o_ref.dtype), y.astype(o_ref.dtype)], axis=-1)


def _sublane(dtype):
    # Dtype-native sublane multiple: 8 (f32), 16 (bf16), 32 (int8/fp8).
    return max(8, 32 // jnp.dtype(dtype).itemsize)


def _round_up(v, m):
    return ((v + m - 1) // m) * m


def _pick_tile_n(n, l, dtype):
    """Pick the row-tile size from a VMEM budget (no artificial row cap)."""
    itemsize = jnp.dtype(dtype).itemsize
    sub = _sublane(dtype)
    # Per tile row: double-buffered input (L) + output (2L) blocks, plus ~3
    # L-wide in-kernel temporaries (x_prev, x_next, y).
    bytes_per_row = (2 * (l + 2 * l) + 3 * l) * itemsize
    budget = 40 * 1024 * 1024          # against the explicit 64 MiB vmem limit
    tile_n = max(sub, (budget // max(bytes_per_row, 1)) // sub * sub)

    if tile_n >= n:
        if n >= 2 * sub:
            # Keep >=2 grid steps so the "parallel" axis can be sharded across
            # both v7x TensorCores.
            tile_n = _round_up(-(-n // 2), sub)
        else:
            tile_n = n                 # tiny N: full-dim block is always legal
    else:
        # Re-balance block sizes over the (unchanged) number of grid steps.
        steps = -(-n // tile_n)
        tile_n = max(sub, min(tile_n, _round_up(-(-n // steps), sub)))
    return tile_n


def skeleton_convolution(x, conv1_w, conv1_b, *, tile_n=None):
    """x: (1, N, L); conv1_w: (1,1,3); conv1_b: (1,).  Returns (1, N, 2L)."""
    assert x.shape[0] == 1, "Conv1d(in_channels=1) requires x.shape[0] == 1"
    _, n, l = x.shape
    x2d = x[0]
    w_flat = conv1_w.reshape(3).astype(jnp.float32)
    b_flat = conv1_b.reshape(1).astype(jnp.float32)
    itemsize = jnp.dtype(x.dtype).itemsize
    sub = _sublane(x.dtype)

    if tile_n is None:
        tile_n = _pick_tile_n(n, l, x.dtype)
    else:
        tile_n = n if tile_n >= n else max(sub, (tile_n // sub) * sub)

    grid = (pl.cdiv(n, tile_n),)

    out2d = pl.pallas_call(
        skeleton_conv_kernel,
        out_shape=jax.ShapeDtypeStruct((n, 2 * l), x.dtype),
        grid=grid,
        in_specs=[
            pl.BlockSpec(memory_space=pltpu.MemorySpace.SMEM),   # conv1 taps (3,)
            pl.BlockSpec(memory_space=pltpu.MemorySpace.SMEM),   # conv1 bias (1,)
            pl.BlockSpec((tile_n, l), lambda i: (i, 0)),         # x row tile
        ],
        out_specs=pl.BlockSpec((tile_n, 2 * l), lambda i: (i, 0)),
        compiler_params=pltpu.CompilerParams(
            dimension_semantics=("parallel",),       # v7x: shard row tiles over both TCs
            vmem_limit_bytes=64 * 1024 * 1024,
        ),
        cost_estimate=pl.CostEstimate(
            flops=7 * n * l,
            transcendentals=0,
            bytes_accessed=3 * n * l * itemsize,     # read N*L, write 2*N*L
        ),
    )(w_flat, b_flat, x2d)
    return out2d[None]


def ref_forward(x, conv1_w, conv1_b):
    """Pure-JAX reference mirroring the PyTorch forward exactly."""
    xp = jnp.transpose(x, (1, 0, 2))  # (N, 1, L)
    y = jax.lax.conv_general_dilated(
        xp, conv1_w, window_strides=(1,), padding=[(1, 1)],
        dimension_numbers=("NCH", "OIH", "NCH"),
    ) + conv1_b.reshape(1, 1, 1)
    y = jnp.transpose(y, (1, 0, 2))   # (1, N, L)
    return jnp.concatenate([x, y], axis=-1)


if __name__ == "__main__":
    key = jax.random.PRNGKey(0)
    k1, k2, k3, k4, kx1, kx2, kx3 = jax.random.split(key, 7)

    # Deterministic parameter init (shapes from the module's __init__).
    conv1_w = jax.random.normal(k1, (1, 1, 3), jnp.float32) * 0.1
    conv1_b = jax.random.normal(k2, (1,), jnp.float32) * 0.1
    # conv2 is declared in __init__ but unused in forward; init for fidelity only.
    conv2_w = jax.random.normal(k3, (1, 1, 5), jnp.float32) * 0.1
    conv2_b = jax.random.normal(k4, (1,), jnp.float32) * 0.1

    tests = [
        # (input, forced tile_n)
        (jax.random.normal(kx1, (1, 8, 16), jnp.float32), None),   # unaligned-L fused-store path
        (jax.random.normal(kx2, (1, 64, 128), jnp.float32), None), # lane-aligned, auto tile -> 2-step grid
        (jax.random.normal(kx3, (1, 40, 128), jnp.float32), 16),   # multi-step grid + partial last block
    ]

    for x, forced_tile in tests:
        out = jax.block_until_ready(
            skeleton_convolution(x, conv1_w, conv1_b, tile_n=forced_tile))
        ref = ref_forward(x, conv1_w, conv1_b)
        assert out.shape == ref.shape, (out.shape, ref.shape)
        assert jnp.allclose(out, ref, atol=1e-5, rtol=1e-5), "mismatch vs reference"

    print("KERNEL_OK")
</pallas_src>

<mosaic_0001>
module attributes {stable_mosaic.version = 11 : i64} {
  func.func @skeleton_conv_kernel(%arg0: i32, %arg1: memref<3xf32, #tpu.memory_space<smem>>, %arg2: memref<1xf32, #tpu.memory_space<smem>>, %arg3: memref<8x16xf32, #tpu.memory_space<vmem>>, %arg4: memref<8x32xf32, #tpu.memory_space<vmem>>) attributes {dimension_semantics = [#tpu.dimension_semantics<parallel>], iteration_bounds = array<i64: 1>, scalar_prefetch = 0 : i64, scratch_operands = 0 : i64, tpu.core_type = #tpu.core_type<tc>, window_params = [{transform_indices = @transform_0, window_bounds = array<i64: 3>}, {transform_indices = @transform_1, window_bounds = array<i64: 1>}, {transform_indices = @transform_2, window_bounds = array<i64: 8, 16>}, {transform_indices = @transform_3, window_bounds = array<i64: 8, 32>}]} {
    %c0 = arith.constant 0 : index
    %c0_0 = arith.constant 0 : index
    %0 = vector.load %arg3[%c0, %c0_0] : memref<8x16xf32, #tpu.memory_space<vmem>>, vector<8x16xf32>
    %c0_1 = arith.constant 0 : index
    %1 = memref.load %arg1[%c0_1] : memref<3xf32, #tpu.memory_space<smem>>
    %c1 = arith.constant 1 : index
    %2 = memref.load %arg1[%c1] : memref<3xf32, #tpu.memory_space<smem>>
    %c2 = arith.constant 2 : index
    %3 = memref.load %arg1[%c2] : memref<3xf32, #tpu.memory_space<smem>>
    %c0_2 = arith.constant 0 : index
    %4 = memref.load %arg2[%c0_2] : memref<1xf32, #tpu.memory_space<smem>>
    %cst = arith.constant 0.000000e+00 : f32
    %5 = vector.broadcast %cst : f32 to vector<8x1xf32>
    %6 = vector.extract_strided_slice %0 {offsets = [0, 0], sizes = [8, 15], strides = [1, 1]} : vector<8x16xf32> to vector<8x15xf32>
    %7 = tpu.concatenate %5, %6 in 1 : vector<8x1xf32>, vector<8x15xf32> -> vector<8x16xf32>
    %8 = vector.extract_strided_slice %0 {offsets = [0, 1], sizes = [8, 15], strides = [1, 1]} : vector<8x16xf32> to vector<8x15xf32>
    %9 = tpu.concatenate %8, %5 in 1 : vector<8x15xf32>, vector<8x1xf32> -> vector<8x16xf32>
    %10 = vector.broadcast %1 : f32 to vector<8x16xf32>
    %11 = arith.mulf %10, %7 : vector<8x16xf32>
    %12 = vector.broadcast %2 : f32 to vector<8x16xf32>
    %13 = arith.mulf %12, %0 : vector<8x16xf32>
    %14 = arith.addf %11, %13 : vector<8x16xf32>
    %15 = vector.broadcast %3 : f32 to vector<8x16xf32>
    %16 = arith.mulf %15, %9 : vector<8x16xf32>
    %17 = arith.addf %14, %16 : vector<8x16xf32>
    %18 = vector.broadcast %4 : f32 to vector<8x16xf32>
    %19 = arith.addf %17, %18 : vector<8x16xf32>
    %20 = tpu.concatenate %0, %19 in 1 : vector<8x16xf32>, vector<8x16xf32> -> vector<8x32xf32>
    %c0_3 = arith.constant 0 : index
    %c0_4 = arith.constant 0 : index
    %21 = vector.load %arg4[%c0_3, %c0_4] : memref<8x32xf32, #tpu.memory_space<vmem>>, vector<8x32xf32>
    tpu.vector_store %arg4[%c0_3, %c0_4], %20 {strides = array<i32>} : memref<8x32xf32, #tpu.memory_space<vmem>>, vector<8x32xf32>,
    return
  }
  func.func @transform_0(%arg0: i32) -> i32 {
    %c0_i32 = arith.constant 0 : i32
    %c0_i32_0 = arith.constant 0 : i32
    return %c0_i32 : i32
  }
  func.func @transform_1(%arg0: i32) -> i32 {
    %c0_i32 = arith.constant 0 : i32
    %c0_i32_0 = arith.constant 0 : i32
    return %c0_i32 : i32
  }
  func.func @transform_2(%arg0: i32) -> (i32, i32) {
    %c0_i32 = arith.constant 0 : i32
    %c0_i32_0 = arith.constant 0 : i32
    return %arg0, %c0_i32 : i32, i32
  }
  func.func @transform_3(%arg0: i32) -> (i32, i32) {
    %c0_i32 = arith.constant 0 : i32
    %c0_i32_0 = arith.constant 0 : i32
    return %arg0, %c0_i32 : i32, i32
  }
}

</mosaic_0001>

<bundles_post_ra>
// kernel: tpu_custom_call.1
= control target key start
LH: loop header
LB: loop body
LE: loop exit
PB: predicated region body
PF: predicated region fallthrough
CT: control target
= control target key end

     0   :  { %9 = vsyncpa [#allocation6], 0  ;;  %s195_s0 = inlined_call_operand.vmem [shape: f32[3], index: 0, kind: input, shape index: {}]   ;;  %s196_s1 = inlined_call_operand.<no memory space> [shape: f32[1], index: 1, kind: input, shape index: {}]   ;;  %s197_s2 = inlined_call_operand.hbm [shape: f32[8,16], index: 2, kind: input, shape index: {}]   ;;  %s198_s3 = inlined_call_operand.hbm [shape: f32[8,32], index: 3, kind: output, shape index: {}]  }
   0x1   :  { %10 = vsyncpa [#allocation4], 0 }
   0x2   :  { %11 = vsyncpa [#allocation5], 0  ;;  %s18_s14 = sshll.u32 %s195_s0, 4  ;;  %s19_s14 = int_to_ptr.vmem [resolvable:$true] %s18_s14 }
   0x3   :  { %s99_s15 = scalar_lea.vmem %s19_s14, 16  ;;  %p104_p1 = scmp.lt.s32.totalorder %s19_s14, %s19_s14 }
   0x4   :  { %p100_p0 = scmp.ne.s32.totalorder %s19_s14, %s99_s15  ;;  %p105_p2 = scmp.lt.s32.totalorder %s99_s15, %s99_s15 }
   0x6   :  { %p106_p3 = por %p105_p2, %p104_p1 }
   0x8   :  { %p107_p4 = pnand %p106_p3, %p100_p0 }
   0xa   :  { %110 = shalt.err (!%p107_p4)
}
   0xb   :  { %s157_s16 = smov [#allocation3]   ;;  %s158_s17 = smov [#allocation7]  }
   0xc   :  { %21 = dma.vmem_to_smem %s19_s14, 16, %s157_s16, [#allocation6]  }
   0xd   :  { %s30_s18 = sshll.u32 %s158_s17, 4  ;;  %s31_s18 = int_to_ptr.vmem [resolvable:$true] %s30_s18 }
   0xe   :  { %s119_s19 = scalar_lea.vmem %s31_s18, 128  ;;  %p124_p6 = scmp.lt.s32.totalorder %s31_s18, %s31_s18 }
   0xf   :  { %p120_p5 = scmp.ne.s32.totalorder %s31_s18, %s119_s19  ;;  %p125_p7 = scmp.lt.s32.totalorder %s119_s19, %s119_s19 }
  0x11   :  { %p126_p8 = por %p125_p7, %p124_p6 }
  0x13   :  { %p127_p9 = pnand %p126_p8, %p120_p5 }
  0x15   :  { %130 = shalt.err (!%p127_p9)
}
  0x16   :  { %33 = dma.hbm_to_vmem [thread:$0]  %s197_s2, 128, %s31_s18, [#allocation4]  }
  0x17   :  { %151 = dma.done.wait [#allocation6], 16  }
  0x18   :  { %152 = vsyncadd [#allocation6], 4294967280 }
  0x19   :  { %153 = dma.done.wait [#allocation4], 128  }
  0x1a   :  { %154 = vsyncadd [#allocation4], 4294967168 }
  0x1b   :  { %40 = sfence }
  0x1c   :  { %v41_v0 = vld [vmem:[#allocation7] sm:$0xff]  ;;  %s159_s21 = smov 1   ;;  %s160_s22 = smov 127   ;;  %vm50_vm0 = vcmask 7168   ;;  %vm55_vm1 = vcmask 121856   ;;  %v65_v12 = vstv %s196_s1  ;;  %vm71_vm2 = vcmask 130048  }
  0x1d   :  { %47 = vrot.lane.b32.xlu0 %v41_v0, %s159_s21  ;;  %s42_s23 = sld [smem:[#allocation3]]  ;;  %s161_s27 = smov 16   ;;  %vm73_vm3 = vcmask 261120  }
  0x1e   :  { %s91_s24 = sld [smem:[#allocation3 + $0x1]]  ;;  %s162_s28 = smov [#allocation8]  }
  0x1f   :  { %s92_s25 = sld [smem:[#allocation3 + $0x2]]  ;;  %s81_s29 = sshll.u32 %s162_s28, 4  ;;  %s82_s29 = int_to_ptr.vmem [resolvable:$true] %s81_s29 }
  0x20   :  { %s131_s30 = scalar_lea.vmem %s82_s29, 128  ;;  %p136_p11 = scmp.lt.s32.totalorder %s82_s29, %s82_s29 }
  0x21   :  { %52 = vrot.lane.b32.xlu0 %v41_v0, %s160_s22  ;;  %p132_p10 = scmp.ne.s32.totalorder %s82_s29, %s131_s30  ;;  %p137_p12 = scmp.lt.s32.totalorder %s131_s30, %s131_s30 }
  0x23   :  { %v57_v1 = vstv %s42_s23  ;;  %p138_p13 = por %p137_p12, %p136_p11 }
  0x24   :  { %v59_v2 = vstv %s91_s24 }
  0x25   :  { %v60_v6 = vmul.f32 %v59_v2, %v41_v0  ;;  %v62_v7 = vstv %s92_s25  ;;  %p139_p0 = pnand %p138_p13, %p132_p10 }
  0x8f   :  { %v48_v3 = vpop.permute.xlu0 %47 }
  0x90   :  { %v51_v4 = vsel %vm50_vm0, 0.0, %v48_v3 }
  0x91   :  { %v58_v5 = vmul.f32 %v57_v1, %v51_v4 }
  0x93   :  { %v53_v8 = vpop.permute.xlu0 %52  ;;  %v61_v10 = vadd.f32 %v60_v6, %v58_v5 }
  0x94   :  { %v56_v9 = vsel %vm55_vm1, %v53_v8, 0.0 }
  0x95   :  { %v63_v11 = vmul.f32 %v62_v7, %v56_v9 }
  0x97   :  { %v64_v13 = vadd.f32 %v63_v11, %v61_v10 }
  0x99   :  { %v66_v14 = vadd.f32 %v65_v12, %v64_v13 }
  0x9b   :  { %68 = vrot.lane.b32.xlu1 %v66_v14, %s161_s27 }
 0x10d   :  { %v69_v15 = vpop.permute.xlu1 %68 }
 0x10e   :  { %v72_v16 = vsel %vm71_vm2, %v41_v0, %v69_v15 }
 0x10f   :  { %74 = vst.msk [vmem:[#allocation8] sm:$0xff] %vm73_vm3, %v72_v16 }
 0x110   :  { %142 = shalt.err (!%p139_p0)
}
 0x111   :  { %84 = dma.vmem_to_hbm [thread:$0]  %s82_s29, 128, %s198_s3, [#allocation5]  }
 0x112   :  { %155 = dma.done.wait [#allocation5], 128  }
 0x113   :  { %156 = vsyncadd [#allocation5], 4294967168 }
 0x114   :  { %88 = vsyncpa [#allocation4], 1 }
 0x115   :  { %89 = vsyncpa [#allocation5], 1 }
 0x116   :  { %90 = vsyncpa [#allocation6], 1 }

</bundles_post_ra>
